<compile_context>
chip_gen: v6e
topology: v6e:2x2x1
jax: 0.10.0
libtpu: 0.0.40
codegen_flags: <defaults>
</compile_context>

<pallas_src>
import functools
import math

import jax
import jax.numpy as jnp
from jax.experimental import pallas as pl
from jax.experimental.pallas import tpu as pltpu

_LANE = 128
_SUBLANE = 8


def _round_up(v, m):
    return ((v + m - 1) // m) * m


def _attn_pool_body(x_ref, w1_ref, b1_ref, w2_ref, b2_ref, o_ref, mask_ref, *,
                    approx_recip):
    TB, S, E = x_ref.shape
    Ep = o_ref.shape[-1]

    x3 = x_ref[...]                                   # (TB,S,E) ingest dtype (f32/bf16)
    xf = x3.reshape(TB * S, E)                        # merge batch+seq -> big MXU M dim

    # fc1 + tanh: one (TB*S, E) @ (E, Hp) MXU pass (bf16/f32 in, f32 acc); tanh on EUP.
    e = jnp.tanh(
        jnp.dot(xf, w1_ref[...], preferred_element_type=jnp.float32)
        + b1_ref[...]                                 # (1, Hp) broadcasts over rows
    )                                                 # (TB*S, Hp) f32

    # fc2 (Hp -> 1) as VPU mul + lane reduce (w2 is a zero-padded (1, Hp) row).
    logits = jnp.sum(e * w2_ref[...], axis=-1, keepdims=True) + b2_ref[0]    # (TB*S, 1)
    logits = logits.reshape(TB, S, 1)

    # Stable exp: per-row max subtraction cancels exactly; the clamp keeps the
    # rescaled epsilon finite for pathological / garbage tail rows.
    row_max = jnp.clip(jnp.max(logits, axis=1, keepdims=True), -60.0, 60.0)  # (TB,1,1)
    p = jnp.exp(logits - row_max)                                            # (TB,S,1)
    if mask_ref is not None:
        p = p * mask_ref[...]                                                # (TB,S,1)

    # Normalization: one EUP reciprocal per row instead of per-element VALU
    # divides.  Result equals exp(z) / (sum(exp(z)*mask) + 1e-8) exactly; the
    # denominator floor makes all-masked / garbage rows produce 0, not NaN.
    denom = jnp.sum(p, axis=1, keepdims=True) + 1e-8 * jnp.exp(-row_max)     # (TB,1,1)
    denom = jnp.maximum(denom, 1e-30)
    alpha = p * pl.reciprocal(denom, approx=approx_recip)                    # (TB,S,1)

    # Weighted sum over S: broadcast-mul + sublane reduce (no M=1 matmul), in
    # f32 even when x was ingested as bf16 (v5e VPU has no bf16).
    x3f = x3.astype(jnp.float32)
    pooled = jnp.sum(x3f * alpha, axis=1)                                    # (TB, E)

    # Lane-dense output slab: o_ref is (TB, Ep) with Ep a multiple of 128 so
    # the writeback is an unmasked dense store; extra lanes are zero.
    if Ep == E:
        o_ref[...] = pooled.astype(o_ref.dtype)
    else:
        o_ref[...] = jnp.zeros_like(o_ref)
        o_ref[:, :E] = pooled.astype(o_ref.dtype)


def _attn_pool_kernel_masked(x_ref, w1_ref, b1_ref, w2_ref, b2_ref, mask_ref,
                             o_ref, *, approx_recip):
    _attn_pool_body(x_ref, w1_ref, b1_ref, w2_ref, b2_ref, o_ref, mask_ref,
                    approx_recip=approx_recip)


def _attn_pool_kernel_unmasked(x_ref, w1_ref, b1_ref, w2_ref, b2_ref, o_ref, *,
                               approx_recip):
    _attn_pool_body(x_ref, w1_ref, b1_ref, w2_ref, b2_ref, o_ref, None,
                    approx_recip=approx_recip)


def _choose_tb(B, S, E, H, x_itemsize, has_mask,
               target_x_tile_bytes=2 << 20,    # 1-4 MiB x-tile sweet spot
               vmem_tile_budget=24 << 20):     # conservative across v5e/v6e/v7x
    """Per-step batch tile TB: multiple of 8 (or B itself when B <= 8)."""
    if B <= _SUBLANE:
        return B
    ep = _round_up(E, _LANE)
    hp = _round_up(H, _LANE)
    # Per-batch-row bytes (VMEM sizes count Mosaic's lane padding).
    x_row_hbm = S * E * x_itemsize
    x_row_vmem = S * ep * x_itemsize
    mask_row_vmem = S * _LANE * 4 if has_mask else 0     # (TB, S, 1) f32 tile
    out_row_vmem = ep * 4
    interm_row = S * hp * 4 * 2 + S * ep * 4             # e/tanh + f32 copy of x (rough)
    per_row_vmem = 2 * (x_row_vmem + mask_row_vmem + out_row_vmem) + interm_row

    # Want: x tile ~target bytes AND an MXU M dim (TB*S) of >= 512.
    tb_want = max(_round_up((512 + S - 1) // S, _SUBLANE),
                  _round_up(max(target_x_tile_bytes // max(x_row_hbm, 1), 1), _SUBLANE))
    # Caps: per-step VMEM budget, and >= 2 grid steps so the "parallel" batch
    # axis can split across v7x's two TensorCores.
    tb_vmem = max(_SUBLANE, (vmem_tile_budget // per_row_vmem) // _SUBLANE * _SUBLANE)
    tb_par = max(_SUBLANE, (B // 2) // _SUBLANE * _SUBLANE)
    tb = max(_SUBLANE, min(tb_want, tb_vmem, tb_par))
    # v6e MXU prefers TB*S to be a multiple of 256 when the caps allow it.
    align = max(_SUBLANE, 256 // math.gcd(S, 256))
    if tb >= align:
        tb = (tb // align) * align
    return tb


def attention_pooling(x, w1, b1, w2, b2, attn_mask=None, *, block_b=None,
                      approx_recip=False):
    """AttentionPooling forward.

    Args:
      x:  (B, S, E) float32 or bfloat16 (bf16 halves the dominant HBM traffic;
          fc1 still accumulates in f32).
      w1: (E, H) = att_fc1.weight.T     b1: (H,) = att_fc1.bias
      w2: (H, 1) = att_fc2.weight.T     b2: (1,) = att_fc2.bias
      attn_mask: optional (B, S).
    Returns: (B, E) float32.
    """
    B, S, E = x.shape
    H = w1.shape[1]

    if x.dtype not in (jnp.float32, jnp.bfloat16):
        x = x.astype(jnp.float32)
    in_dtype = x.dtype                       # no forced f32 astype of x (no extra HBM pass)

    Hp = _round_up(H, _LANE)                 # lane-pad hidden dim (weights only, cheap)
    Ep = _round_up(E, _LANE)                 # lane-dense output slab width

    # Zero-padded params: tanh(0) = 0 and w2_pad = 0, so padded cols contribute 0.
    w1p = jnp.pad(w1.astype(jnp.float32), ((0, 0), (0, Hp - H))).astype(in_dtype)
    b1p = jnp.pad(b1.astype(jnp.float32).reshape(-1), (0, Hp - H)).reshape(1, Hp)
    w2p = jnp.pad(w2.astype(jnp.float32).reshape(-1), (0, Hp - H)).reshape(1, Hp)
    b2s = b2.astype(jnp.float32).reshape(1)  # scalar, lives in SMEM

    has_mask = attn_mask is not None
    if has_mask:
        mask3 = attn_mask.astype(jnp.float32).reshape(B, S, 1)

    if block_b is None:
        TB = _choose_tb(B, S, E, H, jnp.dtype(in_dtype).itemsize, has_mask)
    else:
        TB = min(int(block_b), B)
        assert TB == B or TB % _SUBLANE == 0, "block_b must be a multiple of 8"

    # Ragged B: no wrapper-side jnp.pad of x; Pallas pads the partial last
    # block and drops the tail rows of the output.
    grid = (pl.cdiv(B, TB),)

    x_spec = pl.BlockSpec((TB, S, E), lambda i: (i, 0, 0))
    w1_spec = pl.BlockSpec((E, Hp), lambda i: (0, 0))
    b1_spec = pl.BlockSpec((1, Hp), lambda i: (0, 0))
    w2_spec = pl.BlockSpec((1, Hp), lambda i: (0, 0))
    b2_spec = pl.BlockSpec(memory_space=pltpu.MemorySpace.SMEM)
    out_spec = pl.BlockSpec((TB, Ep), lambda i: (i, 0))

    compiler_params = pltpu.CompilerParams(
        dimension_semantics=("parallel",),   # batch grid can split over v7x's 2 TCs
        vmem_limit_bytes=48 * 1024 * 1024,   # > default scoped limit, < v7x 64 MiB phys
    )
    out_shape = jax.ShapeDtypeStruct((B, Ep), jnp.float32)

    if has_mask:
        mask_spec = pl.BlockSpec((TB, S, 1), lambda i: (i, 0, 0))
        out = pl.pallas_call(
            functools.partial(_attn_pool_kernel_masked, approx_recip=approx_recip),
            grid_spec=pltpu.PrefetchScalarGridSpec(
                num_scalar_prefetch=0,
                grid=grid,
                in_specs=[x_spec, w1_spec, b1_spec, w2_spec, b2_spec, mask_spec],
                out_specs=out_spec,
            ),
            out_shape=out_shape,
            compiler_params=compiler_params,
        )(x, w1p, b1p, w2p, b2s, mask3)
    else:
        out = pl.pallas_call(
            functools.partial(_attn_pool_kernel_unmasked, approx_recip=approx_recip),
            grid_spec=pltpu.PrefetchScalarGridSpec(
                num_scalar_prefetch=0,
                grid=grid,
                in_specs=[x_spec, w1_spec, b1_spec, w2_spec, b2_spec],
                out_specs=out_spec,
            ),
            out_shape=out_shape,
            compiler_params=compiler_params,
        )(x, w1p, b1p, w2p, b2s)

    return out[:, :E] if Ep != E else out


def _reference(x, w1, b1, w2, b2, attn_mask=None):
    # Mirrors the PyTorch module exactly (no max subtraction).
    xf = x.astype(jnp.float32)
    e = jnp.tanh(xf @ w1 + b1)                # (B, S, H)
    alpha = jnp.exp(e @ w2 + b2)              # (B, S, 1)
    if attn_mask is not None:
        alpha = alpha * attn_mask[..., None]
    alpha = alpha / (jnp.sum(alpha, axis=1, keepdims=True) + 1e-8)
    return jnp.einsum("bse,bs1->be", xf, alpha)


if __name__ == "__main__":
    B, S, E, H = 16, 8, 32, 32

    key = jax.random.PRNGKey(0)
    kx, km, kw1, kb1, kw2, kb2, kx2, km2 = jax.random.split(key, 8)

    x = jax.random.normal(kx, (B, S, E), dtype=jnp.float32)
    attn_mask = (jax.random.uniform(km, (B, S)) > 0.3).astype(jnp.float32)

    # nn.Linear-style params (uniform in +/- 1/sqrt(fan_in)).
    lim1 = 1.0 / math.sqrt(E)
    lim2 = 1.0 / math.sqrt(H)
    w1 = jax.random.uniform(kw1, (E, H), minval=-lim1, maxval=lim1, dtype=jnp.float32)
    b1 = jax.random.uniform(kb1, (H,), minval=-lim1, maxval=lim1, dtype=jnp.float32)
    w2 = jax.random.uniform(kw2, (H, 1), minval=-lim2, maxval=lim2, dtype=jnp.float32)
    b2 = jax.random.uniform(kb2, (1,), minval=-lim2, maxval=lim2, dtype=jnp.float32)

    ref_m = _reference(x, w1, b1, w2, b2, attn_mask)
    ref_u = _reference(x, w1, b1, w2, b2, None)

    # 1) masked f32 (B=16 -> TB=8, grid=2)
    out_m = jax.block_until_ready(attention_pooling(x, w1, b1, w2, b2, attn_mask))
    assert out_m.shape == (B, E)
    assert jnp.allclose(out_m, ref_m, atol=1e-5, rtol=1e-5), "masked mismatch"

    # 2) unmasked f32 (specialized kernel, no mask DMA)
    out_u = jax.block_until_ready(attention_pooling(x, w1, b1, w2, b2, None))
    assert jnp.allclose(out_u, ref_u, atol=1e-5, rtol=1e-5), "unmasked mismatch"

    # 3) ragged batch (B=10, no wrapper-side jnp.pad of x; partial last block)
    out_r = jax.block_until_ready(
        attention_pooling(x[:10], w1, b1, w2, b2, attn_mask[:10]))
    assert out_r.shape == (10, E)
    assert jnp.allclose(out_r, ref_m[:10], atol=1e-5, rtol=1e-5), "ragged-batch mismatch"

    # 4) larger batch exercising the auto TB selection (B=64 -> TB=32, grid=2)
    x2 = jax.random.normal(kx2, (64, S, E), dtype=jnp.float32)
    m2 = (jax.random.uniform(km2, (64, S)) > 0.3).astype(jnp.float32)
    out_big = jax.block_until_ready(attention_pooling(x2, w1, b1, w2, b2, m2))
    assert jnp.allclose(out_big, _reference(x2, w1, b1, w2, b2, m2),
                        atol=1e-5, rtol=1e-5), "large-batch mismatch"

    # 5) bf16 ingestion of x (MXU-native, f32 accumulate); compare against the
    #    reference evaluated on the same bf16-rounded x/w1 values.
    xb = x.astype(jnp.bfloat16)
    ref_b = _reference(xb.astype(jnp.float32),
                       w1.astype(jnp.bfloat16).astype(jnp.float32), b1, w2, b2,
                       attn_mask)
    out_b = jax.block_until_ready(attention_pooling(xb, w1, b1, w2, b2, attn_mask))
    assert jnp.allclose(out_b, ref_b, atol=1e-4, rtol=1e-4), "bf16 mismatch"

    # 6) EUP approximate reciprocal for the normalization (looser tolerance).
    out_a = jax.block_until_ready(
        attention_pooling(x, w1, b1, w2, b2, attn_mask, approx_recip=True))
    assert jnp.allclose(out_a, ref_m, atol=5e-3, rtol=5e-3), "approx-recip mismatch"

    print("KERNEL_OK")
</pallas_src>

<mosaic_0001>
module attributes {stable_mosaic.version = 11 : i64} {
  func.func @_attn_pool_kernel_masked(%arg0: i32, %arg1: memref<8x8x32xf32, #tpu.memory_space<vmem>>, %arg2: memref<32x128xf32, #tpu.memory_space<vmem>>, %arg3: memref<1x128xf32, #tpu.memory_space<vmem>>, %arg4: memref<1x128xf32, #tpu.memory_space<vmem>>, %arg5: memref<1xf32, #tpu.memory_space<smem>>, %arg6: memref<8x8x1xf32, #tpu.memory_space<vmem>>, %arg7: memref<8x128xf32, #tpu.memory_space<vmem>>) attributes {dimension_semantics = [#tpu.dimension_semantics<parallel>], iteration_bounds = array<i64: 2>, scalar_prefetch = 0 : i64, scratch_operands = 0 : i64, tpu.core_type = #tpu.core_type<tc>, window_params = [{transform_indices = @transform_0, window_bounds = array<i64: 8, 8, 32>}, {pipeline_mode = #tpu.pipeline_mode<synchronous>, transform_indices = @transform_1, window_bounds = array<i64: 32, 128>}, {pipeline_mode = #tpu.pipeline_mode<synchronous>, transform_indices = @transform_2, window_bounds = array<i64: 1, 128>}, {pipeline_mode = #tpu.pipeline_mode<synchronous>, transform_indices = @transform_3, window_bounds = array<i64: 1, 128>}, {transform_indices = @transform_4, window_bounds = array<i64: 1>}, {transform_indices = @transform_5, window_bounds = array<i64: 8, 8, 1>}, {transform_indices = @transform_6, window_bounds = array<i64: 8, 128>}]} {
    %c0 = arith.constant 0 : index
    %c0_0 = arith.constant 0 : index
    %c0_1 = arith.constant 0 : index
    %0 = vector.load %arg1[%c0, %c0_0, %c0_1] : memref<8x8x32xf32, #tpu.memory_space<vmem>>, vector<8x8x32xf32>
    %1 = vector.shape_cast %0 : vector<8x8x32xf32> to vector<64x32xf32>
    %c0_2 = arith.constant 0 : index
    %c0_3 = arith.constant 0 : index
    %2 = vector.load %arg2[%c0_2, %c0_3] : memref<32x128xf32, #tpu.memory_space<vmem>>, vector<32x128xf32>
    %cst = arith.constant dense<0.000000e+00> : vector<64x128xf32>
    %3 = tpu.matmul %1, %2, %cst {dimension_numbers = #tpu.dot_dimension_numbers<[1], [0], [0], [1], [0, 0, 1, 1], [], []>} : vector<64x32xf32>, vector<32x128xf32>, vector<64x128xf32> -> vector<64x128xf32>
    %c0_4 = arith.constant 0 : index
    %c0_5 = arith.constant 0 : index
    %4 = vector.load %arg3[%c0_4, %c0_5] : memref<1x128xf32, #tpu.memory_space<vmem>>, vector<1x128xf32>
    %5 = vector.broadcast %4 : vector<1x128xf32> to vector<64x128xf32>
    %6 = arith.addf %3, %5 : vector<64x128xf32>
    %7 = math.tanh %6 : vector<64x128xf32>
    %c0_6 = arith.constant 0 : index
    %c0_7 = arith.constant 0 : index
    %8 = vector.load %arg4[%c0_6, %c0_7] : memref<1x128xf32, #tpu.memory_space<vmem>>, vector<1x128xf32>
    %9 = vector.broadcast %8 : vector<1x128xf32> to vector<64x128xf32>
    %10 = arith.mulf %7, %9 : vector<64x128xf32>
    %cst_8 = arith.constant dense<0.000000e+00> : vector<64xf32>
    %11 = vector.multi_reduction <add>, %10, %cst_8 [1] : vector<64x128xf32> to vector<64xf32>
    %12 = vector.shape_cast %11 : vector<64xf32> to vector<64x1xf32>
    %c0_9 = arith.constant 0 : index
    %13 = memref.load %arg5[%c0_9] : memref<1xf32, #tpu.memory_space<smem>>
    %14 = vector.broadcast %13 : f32 to vector<64x1xf32>
    %15 = arith.addf %12, %14 : vector<64x1xf32>
    %16 = vector.shape_cast %15 : vector<64x1xf32> to vector<8x8x1xf32>
    %cst_10 = arith.constant dense<0xFF800000> : vector<8x1xf32>
    %17 = vector.multi_reduction <maximumf>, %16, %cst_10 [1] : vector<8x8x1xf32> to vector<8x1xf32>
    %18 = vector.shape_cast %17 : vector<8x1xf32> to vector<8x1x1xf32>
    %cst_11 = arith.constant -6.000000e+01 : f32
    %cst_12 = arith.constant 6.000000e+01 : f32
    %19 = vector.broadcast %cst_11 : f32 to vector<8x1x1xf32>
    %20 = arith.maximumf %19, %18 : vector<8x1x1xf32>
    %21 = vector.broadcast %cst_12 : f32 to vector<8x1x1xf32>
    %22 = arith.minimumf %21, %20 : vector<8x1x1xf32>
    %23 = vector.broadcast %22 : vector<8x1x1xf32> to vector<8x8x1xf32>
    %24 = arith.subf %16, %23 : vector<8x8x1xf32>
    %25 = math.exp %24 : vector<8x8x1xf32>
    %c0_13 = arith.constant 0 : index
    %c0_14 = arith.constant 0 : index
    %c0_15 = arith.constant 0 : index
    %26 = vector.load %arg6[%c0_13, %c0_14, %c0_15] : memref<8x8x1xf32, #tpu.memory_space<vmem>>, vector<8x8x1xf32>
    %27 = arith.mulf %25, %26 : vector<8x8x1xf32>
    %cst_16 = arith.constant dense<0.000000e+00> : vector<8x1xf32>
    %28 = vector.multi_reduction <add>, %27, %cst_16 [1] : vector<8x8x1xf32> to vector<8x1xf32>
    %29 = vector.shape_cast %28 : vector<8x1xf32> to vector<8x1x1xf32>
    %cst_17 = arith.constant 0.000000e+00 : f32
    %30 = vector.broadcast %cst_17 : f32 to vector<8x1x1xf32>
    %31 = arith.subf %30, %22 : vector<8x1x1xf32>
    %32 = math.exp %31 : vector<8x1x1xf32>
    %cst_18 = arith.constant 9.99999993E-9 : f32
    %33 = vector.broadcast %cst_18 : f32 to vector<8x1x1xf32>
    %34 = arith.mulf %33, %32 : vector<8x1x1xf32>
    %35 = arith.addf %29, %34 : vector<8x1x1xf32>
    %cst_19 = arith.constant 1.000000e-30 : f32
    %36 = vector.broadcast %cst_19 : f32 to vector<8x1x1xf32>
    %37 = arith.maximumf %35, %36 : vector<8x1x1xf32>
    %38 = tpu.reciprocal %37 : vector<8x1x1xf32> -> vector<8x1x1xf32>
    %39 = vector.broadcast %38 : vector<8x1x1xf32> to vector<8x8x1xf32>
    %40 = arith.mulf %27, %39 : vector<8x8x1xf32>
    %41 = vector.broadcast %40 : vector<8x8x1xf32> to vector<8x8x32xf32>
    %42 = arith.mulf %0, %41 : vector<8x8x32xf32>
    %cst_20 = arith.constant dense<0.000000e+00> : vector<8x32xf32>
    %43 = vector.multi_reduction <add>, %42, %cst_20 [1] : vector<8x8x32xf32> to vector<8x32xf32>
    %cst_21 = arith.constant 0.000000e+00 : f32
    %44 = vector.broadcast %cst_21 : f32 to vector<8x128xf32>
    %c0_22 = arith.constant 0 : index
    %c0_23 = arith.constant 0 : index
    %45 = vector.load %arg7[%c0_22, %c0_23] : memref<8x128xf32, #tpu.memory_space<vmem>>, vector<8x128xf32>
    tpu.vector_store %arg7[%c0_22, %c0_23], %44 {strides = array<i32>} : memref<8x128xf32, #tpu.memory_space<vmem>>, vector<8x128xf32>,
    %c0_24 = arith.constant 0 : index
    %c0_25 = arith.constant 0 : index
    %46 = vector.load %arg7[%c0_24, %c0_25] : memref<8x128xf32, #tpu.memory_space<vmem>>, vector<8x32xf32>
    tpu.vector_store %arg7[%c0_24, %c0_25], %43 {strides = array<i32>} : memref<8x128xf32, #tpu.memory_space<vmem>>, vector<8x32xf32>,
    return
  }
  func.func @transform_0(%arg0: i32) -> (i32, i32, i32) {
    %c0_i32 = arith.constant 0 : i32
    %c0_i32_0 = arith.constant 0 : i32
    %c0_i32_1 = arith.constant 0 : i32
    return %arg0, %c0_i32, %c0_i32_0 : i32, i32, i32
  }
  func.func @transform_1(%arg0: i32) -> (i32, i32) {
    %c0_i32 = arith.constant 0 : i32
    %c0_i32_0 = arith.constant 0 : i32
    %c0_i32_1 = arith.constant 0 : i32
    return %c0_i32, %c0_i32_0 : i32, i32
  }
  func.func @transform_2(%arg0: i32) -> (i32, i32) {
    %c0_i32 = arith.constant 0 : i32
    %c0_i32_0 = arith.constant 0 : i32
    %c0_i32_1 = arith.constant 0 : i32
    return %c0_i32, %c0_i32_0 : i32, i32
  }
  func.func @transform_3(%arg0: i32) -> (i32, i32) {
    %c0_i32 = arith.constant 0 : i32
    %c0_i32_0 = arith.constant 0 : i32
    %c0_i32_1 = arith.constant 0 : i32
    return %c0_i32, %c0_i32_0 : i32, i32
  }
  func.func @transform_4(%arg0: i32) -> i32 {
    %c0_i32 = arith.constant 0 : i32
    %c0_i32_0 = arith.constant 0 : i32
    return %c0_i32 : i32
  }
  func.func @transform_5(%arg0: i32) -> (i32, i32, i32) {
    %c0_i32 = arith.constant 0 : i32
    %c0_i32_0 = arith.constant 0 : i32
    %c0_i32_1 = arith.constant 0 : i32
    return %arg0, %c0_i32, %c0_i32_0 : i32, i32, i32
  }
  func.func @transform_6(%arg0: i32) -> (i32, i32) {
    %c0_i32 = arith.constant 0 : i32
    %c0_i32_0 = arith.constant 0 : i32
    return %arg0, %c0_i32 : i32, i32
  }
}

</mosaic_0001>

<bundles_post_ra>
// kernel: tpu_custom_call.1
= control target key start
LH: loop header
LB: loop body
LE: loop exit
PB: predicated region body
PF: predicated region fallthrough
CT: control target
= control target key end

     0   :  { %s1521_s0 = inlined_call_operand.vmem [shape: f32[16,8,32], index: 0, kind: input, shape index: {}]   ;;  %s1522_s1 = inlined_call_operand.hbm [shape: f32[32,128], index: 1, kind: input, shape index: {}]   ;;  %s1523_s2 = inlined_call_operand.vmem [shape: f32[1,128], index: 2, kind: input, shape index: {}]   ;;  %s1524_s3 = inlined_call_operand.vmem [shape: f32[1,128], index: 3, kind: input, shape index: {}]   ;;  %s1525_s4 = inlined_call_operand.<no memory space> [shape: f32[1], index: 4, kind: input, shape index: {}]   ;;  %s1526_s5 = inlined_call_operand.vmem [shape: f32[16,8,1], index: 5, kind: input, shape index: {}]   ;;  %s1527_s6 = inlined_call_operand.hbm [shape: f32[16,128], index: 6, kind: output, shape index: {}]  }
   0x1   :  { %11 = sst [smem:[#allocation2]] %s1525_s4 }
   0x2   :  { %12 = vsyncpa [#allocation4], 0 }
   0x3   :  { %13 = vsyncpa [#allocation5], 0 }
   0x4   :  { %15 = vsyncpa [#allocation5 + $0x1], 0  ;;  %s1268_s23 = smov 0   ;;  %s1270_s24 = smov 0  }
   0x5   :  { %s1272_s25 = smov 0   ;;  %s1274_s26 = smov 0  }
   0x6 LB: > { %s1289_s4 = sadd.s32 4294967295, %s1222_s26   ;;  %s939_s27 = sadd.s32 4294967294, %s1222_s26   ;;  %s1222_s26 = sphi %s1274_s26, %s1535_s26   ;;  %s1218_s25 = sphi %s1272_s25, %s1534_s25   ;;  %s1214_s24 = sphi %s1270_s24, %s1533_s24   ;;  %s1210_s23 = sphi %s1268_s23, %s1532_s23  }
   0x7   : > { %s1293_s28 = sadd.s32 1, %s1222_s26   ;;  %s164_s29 = sadd.s32 1, %s1218_s25 }
   0x8   : > { %s161_s30 = ssub.s32 %s1222_s26, %s1293_s28  ;;  %p174_p0 = scmp.ne.s32.totalorder %s1218_s25, %s1214_s24 }
   0x9   : > { %p162_p1 = scmp.eq.s32.totalorder %s161_s30, 0  ;;  %p175_p2 = scmp.eq.s32.totalorder %s1289_s4, 1 }
   0xa   : > { %p180_p3 = scmp.ne.s32.totalorder %s1214_s24, %s1210_s23  ;;  %p181_p4 = scmp.eq.s32.totalorder %s939_s27, 1 }
   0xb   : > { %s1304_s7 = scalar_select %p162_p1, %s1218_s25, %s164_s29  }
   0xc   : > { %p1306_p5 = por %p175_p2, %p174_p0  ;;  %p1310_p6 = por %p181_p4, %p180_p3 }
   0xd   : > { %p940_p7 = scmp.ge.s32.totalorder %s1222_s26, 1  ;;  %p188_p8 = scmp.lt.s32.totalorder %s1222_s26, 3 }
   0xe   : > { %s1529_s9 = scalar_select %p1310_p6, 1, 0 }
   0xf   : > { %p1026_p9 = scmp.eq.s32.totalorder %s1289_s4, 0  ;;  %p1317_p10 = pnand %p940_p7, %p188_p8 }
  0x10   : > { %s1224_s11 = smov [#allocation3]  }
  0x11   : > { %s200_s12 = sshll.u32 %s1224_s11, 4  ;;  %p1018_p11 = pneg %p1317_p10  ;;  %s201_s12 = int_to_ptr.vmem [resolvable:$true] %s200_s12 }
  0x12   : > { %s1143_s13 = scalar_lea.vmem %s201_s12, 512  ;;  %p1151_p3 = scmp.lt.s32.totalorder %s201_s12, %s201_s12 }
  0x13   : > { %p1019_p12 = pnand %p1026_p9, %p1018_p11  ;;  %p1144_p0 = scmp.ne.s32.totalorder %s201_s12, %s1143_s13 }
  0x14   : > { %p1152_p4 = scmp.lt.s32.totalorder %s1143_s13, %s1143_s13 }
  0x15   : > { %p1134_p13 = pneg %p1019_p12 }
  0x16   : > { %p1153_p6 = por %p1152_p4, %p1151_p3 }
  0x17   : > { %p1146_p1 = pnand %p1144_p0, %p1134_p13 }
  0x19   : > { %p1147_p2 = pneg %p1146_p1 }
  0x1b   : > { %p1154_p7 = pnand %p1153_p6, %p1147_p2 }
  0x1d   : > { %1157 = shalt.err (!%p1154_p7)
}
  0x1e   : > { %s1225_s14 = smov 128   ;;  %s1226_s15 = smov 8  }
  0x1f   : > { %1021 = dma.hbm_to_vmem [thread:$0]  (!%p1019_p12), %s1522_s1, 512, %s201_s12, [#allocation4], %s1225_s14, %s1225_s14, %s1226_s15  }
  0x20   : > { %243 = sbr.rel (%p1317_p10) target bundleno = 651 (0x28b), region = 44 }
  0x25   : > { %1201 = dma.done.wait (%p1026_p9), [#allocation4], 512  }
  0x26   : > { %1203 = vsyncadd (%p1026_p9), [#allocation4], 4294966784  ;;  %s946_s18 = sshll.u32 %s1289_s4, 3  ;;  %v301_v0 = vld [vmem:[#allocation3 + $0x18] sm:$0xff]  ;;  %v300_v1 = vld [vmem:[#allocation3 + $0x10] sm:$0xff]  ;;  %vm309_vm0 = vcmask 261120  }
  0x27   : > { %p279_p8 = scmp.lt.s32.totalorder %s946_s18, 15  ;;  %984 = vmatprep.subr.mxu0 %v301_v0  ;;  %1004 = vmatprep.subr.mxu1 %v301_v0  ;;  %v299_v3 = vld [vmem:[#allocation3 + $0x8] sm:$0xff]  ;;  %v298_v4 = vld [vmem:[#allocation3] sm:$0xff]  ;;  %v1227_v46 = vmov 0   ;;  %s478_s11 = sld [smem:[#allocation2]]  ;;  %vm592_vm1 = vcmask 7168  }
  0x28   : > { %985 = vmatpush3.msra.mxu0 %v301_v0  ;;  %1008 = vmatpush3.msra.mxu1 %v301_v0  ;;  %v950_v12 = vld [vmem:[%s1523_s2] ss:$0 sm:$0xff]  ;;  %s275_s15 = sand.u32 1, %s1214_s24   ;;  %vm826_vm2 = vcmask 1041409   ;;  %vm828_vm3 = vcmask 1042434   ;;  %vm830_vm4 = vcmask 1043459  }
  0x29   : > { %s1537_s18 = smov (!%p279_p8, %s946_s18), 15  ;;  %986 = vmatprep.subr.mxu0 %v300_v1  ;;  %1005 = vmatprep.subr.mxu1 %v300_v1  ;;  %v959_v29 = vld [vmem:[%s1524_s3] ss:$0 sm:$0xff]  ;;  %s945_s16 = sshll.u32 %s275_s15, 3  ;;  %vm832_vm5 = vcmask 1044484   ;;  %vm834_vm6 = vcmask 1045509  }
  0x2a   : > { %s947_s19 = sshll.u32 %s1537_s18, 3  ;;  %987 = vmatpush3.msra.mxu0 %v300_v1  ;;  %1009 = vmatpush3.msra.mxu1 %v300_v1  ;;  %s1458_s17 = scalar_lea.vmem [#allocation6], %s945_s16  ;;  %vm836_vm7 = vcmask 1046534   ;;  %vm838_vm8 = vcmask 1047559  }
  0x2b   : > { %s1343_s22 = scalar_lea.vmem %s1521_s0, %s947_s19  ;;  %988 = vmatprep.subr.mxu0 %v299_v3  ;;  %1006 = vmatprep.subr.mxu1 %v299_v3  ;;  %s1409_s14 = scalar_lea.vmem %s1526_s5, %s947_s19 }
  0x2c   : > { %v1346_v2 = vld [vmem:[%s1343_s22] sm:$0xff]  ;;  %989 = vmatpush3.msra.mxu0 %v299_v3  ;;  %v1351_v5 = vld [vmem:[%s1343_s22 + $0x8] sm:$0xff]  ;;  %1010 = vmatpush3.msra.mxu1 %v299_v3  ;;  %v1354_v6 = vld [vmem:[%s1343_s22 + $0x10] sm:$0xff]  ;;  %s969_s18 = sshll.u32 %s1289_s4, 7  ;;  %s856_s19 = sshll.u32 %s1458_s17, 4  ;;  %s857_s19 = int_to_ptr.vmem [resolvable:$true] %s856_s19 }
  0x2d   : > { %992 = vmatprep.mubr.msk.f32.mxu0 %vm309_vm0, %v1346_v2  ;;  %990 = vmatprep.subr.mxu0 %v298_v4  ;;  %v1357_v7 = vld [vmem:[%s1343_s22 + $0x20] sm:$0xff]  ;;  %v1360_v8 = vld [vmem:[%s1343_s22 + $0x28] sm:$0xff]  ;;  %v1365_v9 = vld [vmem:[%s1343_s22 + $0x30] sm:$0xff]  ;;  %v1391_v47 = vstv %s478_s11  ;;  %s843_s27 = scalar_lea.sflag [#allocation5], %s275_s15  ;;  %s1158_s29 = scalar_lea.vmem %s857_s19, 128 }
  0x2e   : > { %991 = vmatpush3.msra.mxu0 %v298_v4  ;;  %1007 = vmatprep.subr.mxu1 %v298_v4  ;;  %v1370_v10 = vld [vmem:[%s1343_s22 + $0x18] sm:$0xff]  ;;  %p1159_p6 = scmp.ne.s32.totalorder %s857_s19, %s1158_s29  ;;  %s1229_s4 = smov [#allocation6]  }
  0x2f   : > { %993 = vmatmul.mubr.msk.f32.vlgmr.msra.gmra.mxu0 %vm309_vm0, %v1351_v5  ;;  %1011 = vmatpush3.msra.mxu1 %v298_v4  ;;  %v1379_v11 = vld [vmem:[%s1343_s22 + $0x38] sm:$0xff]  ;;  %s1482_s22 = scalar_lea.hbm %s1527_s6, %s969_s18  ;;  %s1162_s30 = sshll.u32 %s1229_s4, 4  ;;  %s1163_s30 = int_to_ptr.vmem [resolvable:$false] %s1162_s30 }
  0x30   : > { %995 = vmatprep.mubr.msk.f32.mxu0 %vm309_vm0, %v1354_v6  ;;  %998 = vmatprep.mubr.msk.f32.mxu1 %vm309_vm0, %v1357_v7  ;;  %p1160_p9 = pnand %p1159_p6, %p1306_p5  ;;  %s1164_s10 = scalar_lea.vmem %s1163_s30, 256 }
  0x31   : > { %999 = vmatmul.mubr.msk.f32.vlgmr.msra.gmra.mxu1 %vm309_vm0, %v1360_v8  ;;  %1067 = vset.pattern.permute.xlu1 %v1227_v46  ;;  %p1165_p11 = scmp.lt.s32.totalorder %s857_s19, %s1163_s30  ;;  %p1166_p12 = scmp.lt.s32.totalorder %s1164_s10, %s1158_s29 }
  0x32   : > { %1001 = vmatprep.mubr.msk.f32.mxu1 %vm309_vm0, %v1365_v9  ;;  %1066 = vset.pattern.permute.xlu0 %v1227_v46  ;;  %p1161_p10 = pneg %p1160_p9 }
  0x33   : > { %996 = vmatmul.mubr.msk.f32.gmra.mxu0 %vm309_vm0, %v1370_v10  ;;  %p1167_p13 = por %p1166_p12, %p1165_p11 }
  0x35   : > { %1002 = vmatmul.mubr.msk.f32.gmra.mxu1 %vm309_vm0, %v1379_v11  ;;  %p1168_p0 = pnand %p1167_p13, %p1161_p10 }
  0xef   : > { %v994_v13 = vpop.f32.mrf.mxu0 }
  0xf0   : > { %v406_v14 = vadd.f32 %v994_v13, %v950_v12 }
  0xf1   : > { %v400_v15 = vpop.f32.mrf.mxu0  ;;  %v1000_v16 = vpop.f32.mrf.mxu1 }
  0xf2   : > { %1068 = vtanh.f32 %v406_v14  ;;  %v401_v17 = vadd.f32 %v950_v12, %v400_v15  ;;  %v426_v23 = vadd.f32 %v1000_v16, %v950_v12 }
  0xf3   : > { %v997_v18 = vpop.f32.mrf.mxu0  ;;  %v420_v19 = vpop.f32.mrf.mxu1 }
  0xf4   : > { %1070 = vtanh.f32 %v401_v17  ;;  %v416_v20 = vadd.f32 %v997_v18, %v950_v12  ;;  %v421_v21 = vadd.f32 %v950_v12, %v420_v19 }
  0xf5   : > { %v410_v22 = vpop.f32.mrf.mxu0  ;;  %v1003_v24 = vpop.f32.mrf.mxu1 }
  0xf6   : > { %1072 = vtanh.f32 %v416_v20  ;;  %v411_v25 = vadd.f32 %v950_v12, %v410_v22  ;;  %v436_v28 = vadd.f32 %v1003_v24, %v950_v12 }
  0xf7   : > { %1074 = vtanh.f32 %v421_v21  ;;  %v430_v26 = vpop.f32.mrf.mxu1 }
  0xf8   : > { %1076 = vtanh.f32 %v411_v25  ;;  %v431_v27 = vadd.f32 %v950_v12, %v430_v26 }
  0xf9   : > { %1078 = vtanh.f32 %v426_v23 }
  0xfa   : > { %1080 = vtanh.f32 %v431_v27 }
  0xfb   : > { %1082 = vtanh.f32 %v436_v28 }
  0xff   : > { %v1069_v30 = vpop.eup %1068 }
 0x100   : > { %v455_v31 = vmul.f32 %v1069_v30, %v959_v29 }
 0x101   : > { %v1071_v32 = vpop.eup %1070 }
 0x102   : > { %464 = vadd.xlane.f32.xlu0 %v455_v31  ;;  %v454_v36 = vmul.f32 %v1071_v32, %v959_v29 }
 0x103   : > { %v1073_v33 = vpop.eup %1072 }
 0x104   : > { %v1075_v34 = vpop.eup %1074  ;;  %v457_v35 = vmul.f32 %v1073_v33, %v959_v29 }
 0x105   : > { %v1077_v37 = vpop.eup %1076  ;;  %v458_v39 = vmul.f32 %v1075_v34, %v959_v29 }
 0x106   : > { %v1079_v38 = vpop.eup %1078  ;;  %468 = vadd.xlane.f32.xlu1 %v457_v35  ;;  %462 = vadd.xlane.f32.xlu0 %v454_v36  ;;  %v456_v41 = vmul.f32 %v1077_v37, %v959_v29 }
 0x107   : > { %v1081_v40 = vpop.eup %1080  ;;  %v459_v42 = vmul.f32 %v1079_v38, %v959_v29 }
 0x108   : > { %v460_v43 = vmul.f32 %v1081_v40, %v959_v29  ;;  %v1083_v44 = vpop.eup %1082 }
 0x109   : > { %v461_v45 = vmul.f32 %v1083_v44, %v959_v29 }
 0x10a   : > { %466 = vadd.xlane.f32.xlu1 %v456_v41  ;;  %470 = vadd.xlane.f32.xlu0 %v458_v39 }
 0x10e   : > { %472 = vadd.xlane.f32.xlu1 %v459_v42  ;;  %474 = vadd.xlane.f32.xlu0 %v460_v43 }
 0x112   : > { %476 = vadd.xlane.f32.xlu1 %v461_v45 }
 0x18b   : > { %v465_v48 = vpop.xlane.xlu0 %464 }
 0x18c   : > { %v481_v49 = vadd.f32 %v1391_v47, %v465_v48 }
 0x18e   : > { %v494_v50 = vrot.slane %v481_v49, 4 }
 0x18f   : > { %v469_v51 = vpop.xlane.xlu1 %468  ;;  %v463_v52 = vpop.xlane.xlu0 %462 }
 0x190   : > { %v495_v53 = vmax.f32 %v481_v49, %v494_v50  ;;  %v483_v54 = vadd.f32 %v1391_v47, %v469_v51  ;;  %v480_v55 = vadd.f32 %v1391_v47, %v463_v52 }
 0x192   : > { %v496_v56 = vrot.slane %v495_v53, 2  ;;  %v506_v57 = vrot.slane %v483_v54, 4  ;;  %v488_v58 = vrot.slane %v480_v55, 4 }
 0x193   : > { %v467_v59 = vpop.xlane.xlu1 %466  ;;  %v471_v60 = vpop.xlane.xlu0 %470 }
 0x194   : > { %v497_v61 = vmax.f32 %v495_v53, %v496_v56  ;;  %v507_v62 = vmax.f32 %v483_v54, %v506_v57  ;;  %v489_v63 = vmax.f32 %v480_v55, %v488_v58  ;;  %v482_v0 = vadd.f32 %v1391_v47, %v467_v59 }
 0x195   : > { %v484_v1 = vadd.f32 %v1391_v47, %v471_v60 }
 0x196   : > { %v498_v3 = vrot.slane %v497_v61, 1  ;;  %v508_v4 = vrot.slane %v507_v62, 2  ;;  %v490_v12 = vrot.slane %v489_v63, 2  ;;  %v500_v13 = vrot.slane %v482_v0, 4 }
 0x197   : > { %v512_v14 = vrot.slane %v484_v1, 4  ;;  %v473_v15 = vpop.xlane.xlu1 %472  ;;  %v475_v16 = vpop.xlane.xlu0 %474 }
 0x198   : > { %v499_v17 = vmax.f32 %v497_v61, %v498_v3  ;;  %v509_v18 = vmax.f32 %v507_v62, %v508_v4  ;;  %v491_v19 = vmax.f32 %v489_v63, %v490_v12  ;;  %v501_v20 = vmax.f32 %v482_v0, %v500_v13 }
 0x199   : > { %v513_v21 = vmax.f32 %v484_v1, %v512_v14  ;;  %v485_v22 = vadd.f32 %v1391_v47, %v473_v15  ;;  %v486_v23 = vadd.f32 %v1391_v47, %v475_v16 }
 0x19a   : > { %v961_v24 = vclamps-f32 %v499_v17, 60.0  ;;  %v510_v25 = vrot.slane %v509_v18, 1  ;;  %v492_v26 = vrot.slane %v491_v19, 1  ;;  %v502_v27 = vrot.slane %v501_v20, 2 }
 0x19b   : > { %v514_v28 = vrot.slane %v513_v21, 2  ;;  %v518_v29 = vrot.slane %v485_v22, 4  ;;  %v524_v30 = vrot.slane %v486_v23, 4  ;;  %v477_v50 = vpop.xlane.xlu1 %476 }
 0x19c   : > { %v553_v31 = vsub.f32 %v481_v49, %v961_v24  ;;  %v1400_v32 = vmax.f32 %v509_v18, %v510_v25  ;;  %v493_v33 = vmax.f32 %v491_v19, %v492_v26  ;;  %v503_v34 = vmax.f32 %v501_v20, %v502_v27  ;;  %v577_v18 = vld [vmem:[%s1409_s14 + $0x8] sm:$0xff] }
 0x19d   : > { %v515_v35 = vmax.f32 %v513_v21, %v514_v28  ;;  %v519_v36 = vmax.f32 %v485_v22, %v518_v29  ;;  %v525_v37 = vmax.f32 %v486_v23, %v524_v30  ;;  %v650_v51 = vsub.f32 0.0, %v961_v24 }
 0x19e   : > { %v562_v38 = vmul.f32 1.442695, %v553_v31  ;;  %v963_v39 = vclamps-f32 %v1400_v32, 60.0  ;;  %v960_v40 = vclamps-f32 %v493_v33, 60.0  ;;  %v504_v41 = vrot.slane %v503_v34, 1  ;;  %v576_v33 = vld [vmem:[%s1409_s14] sm:$0xff] }
 0x19f   : > { %v516_v42 = vrot.slane %v515_v35, 1  ;;  %v520_v43 = vrot.slane %v519_v36, 2  ;;  %v526_v44 = vrot.slane %v525_v37, 2  ;;  %v487_v61 = vadd.f32 %v1391_v47, %v477_v50 }
 0x1a0   : > { %1084 = vpow2.f32 %v562_v38  ;;  %v555_v45 = vsub.f32 %v483_v54, %v963_v39  ;;  %v552_v46 = vsub.f32 %v480_v55, %v960_v40  ;;  %v505_v48 = vmax.f32 %v503_v34, %v504_v41 }
 0x1a1   : > { %v517_v49 = vmax.f32 %v515_v35, %v516_v42  ;;  %v521_v56 = vmax.f32 %v519_v36, %v520_v43  ;;  %v527_v59 = vmax.f32 %v525_v37, %v526_v44  ;;  %v659_v3 = vmul.f32 1.442695, %v650_v51 }
 0x1a2   : > { %v566_v52 = vmul.f32 1.442695, %v555_v45  ;;  %v560_v53 = vmul.f32 1.442695, %v552_v46  ;;  %v962_v57 = vclamps-f32 %v505_v48, 60.0  ;;  %v649_v4 = vsub.f32 0.0, %v960_v40 }
 0x1a3   : > { %v964_v58 = vclamps-f32 %v517_v49, 60.0  ;;  %v522_v60 = vrot.slane %v521_v56, 1  ;;  %v528_v55 = vrot.slane %v527_v59, 1  ;;  %v530_v16 = vrot.slane %v487_v61, 4  ;;  %v578_v49 = vld [vmem:[%s1409_s14 + $0x10] sm:$0xff] }
 0x1a4   : > { %1086 = vpow2.f32 %v566_v52  ;;  %v554_v62 = vsub.f32 %v482_v0, %v962_v57  ;;  %v652_v34 = vsub.f32 0.0, %v963_v39  ;;  %v651_v41 = vsub.f32 0.0, %v962_v57 }
 0x1a5   : > { %v556_v63 = vsub.f32 %v484_v1, %v964_v58  ;;  %1088 = vpow2.f32 %v560_v53  ;;  %v523_v54 = vmax.f32 %v521_v56, %v522_v60  ;;  %v529_v15 = vmax.f32 %v527_v59, %v528_v55 }
 0x1a6   : > { %v564_v12 = vmul.f32 1.442695, %v554_v62  ;;  %v657_v1 = vmul.f32 1.442695, %v649_v4  ;;  %v531_v17 = vmax.f32 %v487_v61, %v530_v16  ;;  %v653_v27 = vsub.f32 0.0, %v964_v58  ;;  %v580_v58 = vld [vmem:[%s1409_s14 + $0x20] sm:$0xff] }
 0x1a7   : > { %v568_v13 = vmul.f32 1.442695, %v556_v63  ;;  %v965_v14 = vclamps-f32 %v523_v54, 60.0  ;;  %v966_v0 = vclamps-f32 %v529_v15, 60.0  ;;  %v663_v39 = vmul.f32 1.442695, %v652_v34 }
 0x1a8   : > { %1090 = vpow2.f32 %v564_v12  ;;  %v532_v24 = vrot.slane %v531_v17, 2  ;;  %v665_v37 = vmul.f32 1.442695, %v653_v27  ;;  %v661_v60 = vmul.f32 1.442695, %v651_v41  ;;  %v581_v12 = vld [vmem:[%s1409_s14 + $0x28] sm:$0xff] }
 0x1a9   : > { %1092 = vpow2.f32 %v659_v3  ;;  %v557_v47 = vsub.f32 %v485_v22, %v965_v14  ;;  %v558_v20 = vsub.f32 %v486_v23, %v966_v0  ;;  %v579_v22 = vld [vmem:[%s1409_s14 + $0x18] sm:$0xff]  ;;  %v654_v29 = vsub.f32 0.0, %v965_v14 }
 0x1aa   : > { %1094 = vpow2.f32 %v568_v13  ;;  %v533_v28 = vmax.f32 %v531_v17, %v532_v24  ;;  %v655_v3 = vsub.f32 0.0, %v966_v0  ;;  %v582_v17 = vld [vmem:[%s1409_s14 + $0x30] sm:$0xff] }
 0x1ab   : > { %v570_v19 = vmul.f32 1.442695, %v557_v47  ;;  %v572_v25 = vmul.f32 1.442695, %v558_v20  ;;  %v667_v42 = vmul.f32 1.442695, %v654_v29 }
 0x1ac   : > { %v534_v32 = vrot.slane %v533_v28, 1  ;;  %v669_v24 = vmul.f32 1.442695, %v655_v3 }
 0x1ad   : > { %v1085_v21 = vpop.eup %1084  ;;  %1096 = vpow2.f32 %v570_v19 }
 0x1ae   : > { %v1412_v26 = vmul.f32 %v1085_v21, %v577_v18  ;;  %1098 = vpow2.f32 %v657_v1  ;;  %v535_v38 = vmax.f32 %v533_v28, %v534_v32 }
 0x1af   : > { %1100 = vpow2.f32 %v572_v25 }
 0x1b0   : > { %v600_v30 = vsel %vm592_vm1, %v1412_v26, 0.0  ;;  %v967_v45 = vclamps-f32 %v535_v38, 60.0  ;;  %1102 = vpow2.f32 %v665_v37 }
 0x1b1   : > { %v1087_v31 = vpop.eup %1086  ;;  %v601_v23 = vrot.slane %v600_v30, 4  ;;  %1104 = vpow2.f32 %v667_v42 }
 0x1b2   : > { %v1418_v35 = vmul.f32 %v1087_v31, %v579_v22  ;;  %v1089_v36 = vpop.eup %1088  ;;  %v559_v53 = vsub.f32 %v487_v61, %v967_v45  ;;  %1106 = vpow2.f32 %v663_v39  ;;  %v656_v22 = vsub.f32 0.0, %v967_v45 }
 0x1b3   : > { %v602_v40 = vadd.f32 %v601_v23, %v600_v30  ;;  %v1420_v43 = vmul.f32 %v1089_v36, %v576_v33 }
 0x1b4   : > { %v614_v44 = vsel %vm592_vm1, %v1418_v35, 0.0  ;;  %v574_v54 = vmul.f32 1.442695, %v559_v53  ;;  %v671_v45 = vmul.f32 1.442695, %v656_v22 }
 0x1b5   : > { %v603_v46 = vrot.slane %v602_v40, 2  ;;  %v615_v48 = vrot.slane %v614_v44, 4  ;;  %v1091_v50 = vpop.eup %1090  ;;  %v593_v51 = vsel %vm592_vm1, %v1420_v43, 0.0 }
 0x1b6   : > { %v1093_v52 = vpop.eup %1092  ;;  %v594_v57 = vrot.slane %v593_v51, 4  ;;  %v1428_v63 = vmul.f32 %v1091_v50, %v578_v49  ;;  %1108 = vpow2.f32 %v574_v54 }
 0x1b7   : > { %v604_v56 = vadd.f32 %v603_v46, %v602_v40  ;;  %v1095_v59 = vpop.eup %1094  ;;  %v616_v62 = vadd.f32 %v615_v48, %v614_v44  ;;  %v674_v13 = vmul.f32 1e-08, %v1093_v52  ;;  %1110 = vpow2.f32 %v661_v60 }
 0x1b8   : > { %v595_v4 = vadd.f32 %v594_v57, %v593_v51  ;;  %v1431_v14 = vmul.f32 %v1095_v59, %v580_v58  ;;  %v607_v61 = vsel %vm592_vm1, %v1428_v63, 0.0 }
 0x1b9   : > { %v605_v55 = vrot.slane %v604_v56, 1  ;;  %v608_v1 = vrot.slane %v607_v61, 4  ;;  %v617_v20 = vrot.slane %v616_v62, 2 }
 0x1ba   : > { %v1097_v15 = vpop.eup %1096  ;;  %v596_v47 = vrot.slane %v595_v4, 2  ;;  %v621_v19 = vsel %vm592_vm1, %v1431_v14, 0.0 }
 0x1bb   : > { %v606_v16 = vadd.f32 %v605_v55, %v604_v56  ;;  %v1099_v18 = vpop.eup %1098  ;;  %v1436_v0 = vmul.f32 %v1097_v15, %v581_v12  ;;  %v622_v28 = vrot.slane %v621_v19, 4  ;;  %v609_v30 = vadd.f32 %v608_v1, %v607_v61 }
 0x1bc   : > { %v1101_v21 = vpop.eup %1100  ;;  %v597_v27 = vadd.f32 %v596_v47, %v595_v4  ;;  %v673_v32 = vmul.f32 1e-08, %v1099_v18  ;;  %v618_v37 = vadd.f32 %v617_v20, %v616_v62  ;;  %v583_v62 = vld [vmem:[%s1409_s14 + $0x38] sm:$0xff] }
 0x1bd   : > { %v682_v25 = vadd.f32 %v674_v13, %v606_v16  ;;  %v628_v29 = vsel %vm592_vm1, %v1436_v0, 0.0  ;;  %v1442_v31 = vmul.f32 %v1101_v21, %v582_v17  ;;  %v623_v36 = vadd.f32 %v622_v28, %v621_v19  ;;  %v1103_v39 = vpop.eup %1102 }
 0x1be   : > { %v598_v33 = vrot.slane %v597_v27, 1  ;;  %v629_v34 = vrot.slane %v628_v29, 4  ;;  %v610_v38 = vrot.slane %v609_v30, 2  ;;  %v619_v52 = vrot.slane %v618_v37, 1  ;;  %v1105_v53 = vpop.eup %1104 }
 0x1bf   : > { %v690_v23 = vmax.f32 %v682_v25, 1e-30  ;;  %v635_v40 = vsel %vm592_vm1, %v1442_v31, 0.0  ;;  %v624_v46 = vrot.slane %v623_v36, 2  ;;  %v1107_v3 = vpop.eup %1106  ;;  %v677_v4 = vmul.f32 1e-08, %v1103_v39 }
 0x1c0   : > { %v599_v41 = vadd.f32 %v598_v33, %v597_v27  ;;  %v630_v42 = vadd.f32 %v629_v34, %v628_v29  ;;  %v636_v44 = vrot.slane %v635_v40, 4  ;;  %v611_v58 = vadd.f32 %v610_v38, %v609_v30 }
 0x1c1   : > { %1112 = vrcp.f32 %v690_v23  ;;  %v625_v51 = vadd.f32 %v624_v46, %v623_v36  ;;  %v678_v12 = vmul.f32 1e-08, %v1105_v53  ;;  %v620_v61 = vadd.f32 %v619_v52, %v618_v37 }
 0x1c2   : > { %1114 = vpow2.f32 %v669_v24  ;;  %v681_v48 = vadd.f32 %v673_v32, %v599_v41  ;;  %v631_v49 = vrot.slane %v630_v42, 2  ;;  %v637_v50 = vadd.f32 %v636_v44, %v635_v40 }
 0x1c3   : > { %1116 = vpow2.f32 %v671_v45  ;;  %v626_v60 = vrot.slane %v625_v51, 1  ;;  %v1109_v55 = vpop.eup %1108  ;;  %v612_v47 = vrot.slane %v611_v58, 1  ;;  %v676_v18 = vmul.f32 1e-08, %v1107_v3 }
 0x1c4   : > { %v689_v56 = vmax.f32 %v681_v48, 1e-30  ;;  %v632_v57 = vadd.f32 %v631_v49, %v630_v42  ;;  %v638_v59 = vrot.slane %v637_v50, 2  ;;  %v1111_v15 = vpop.eup %1110  ;;  %v591_v17 = vmul.f32 %v1109_v55, %v583_v62 }
 0x1c5   : > { %v627_v13 = vadd.f32 %v626_v60, %v625_v51  ;;  %v684_v24 = vadd.f32 %v676_v18, %v620_v61  ;;  %v613_v22 = vadd.f32 %v612_v47, %v611_v58  ;;  %v675_v23 = vmul.f32 1e-08, %v1111_v15 }
 0x1c6   : > { %1118 = vrcp.f32 %v689_v56  ;;  %v633_v54 = vrot.slane %v632_v57, 1  ;;  %v639_v1 = vadd.f32 %v638_v59, %v637_v50  ;;  %v642_v21 = vsel %vm592_vm1, %v591_v17, 0.0 }
 0x1c7   : > { %v685_v19 = vadd.f32 %v677_v4, %v627_v13  ;;  %v643_v25 = vrot.slane %v642_v21, 4  ;;  %v692_v37 = vmax.f32 %v684_v24, 1e-30  ;;  %v683_v38 = vadd.f32 %v675_v23, %v613_v22 }
 0x1c8   : > { %v634_v16 = vadd.f32 %v633_v54, %v632_v57  ;;  %v640_v29 = vrot.slane %v639_v1, 1 }
 0x1c9   : > { %v693_v28 = vmax.f32 %v685_v19, 1e-30  ;;  %v644_v32 = vadd.f32 %v643_v25, %v642_v21  ;;  %v691_v49 = vmax.f32 %v683_v38, 1e-30 }
 0x1ca   : > { %v686_v20 = vadd.f32 %v678_v12, %v634_v16  ;;  %v641_v40 = vadd.f32 %v640_v29, %v639_v1 }
 0x1cb   : > { %v645_v36 = vrot.slane %v644_v32, 2 }
 0x1cc   : > { %v694_v27 = vmax.f32 %v686_v20, 1e-30 }
 0x1cd   : > { %v646_v41 = vadd.f32 %v645_v36, %v644_v32 }
 0x1ce   : > { %v1113_v30 = vpop.eup %1112  ;;  %1120 = vrcp.f32 %v694_v27 }
 0x1cf   : > { %v706_v33 = vmul.f32 %v1113_v30, %v1412_v26  ;;  %v1115_v34 = vpop.eup %1114  ;;  %1122 = vrcp.f32 %v693_v28  ;;  %v647_v46 = vrot.slane %v646_v41, 1 }
 0x1d0   : > { %v1117_v42 = vpop.eup %1116  ;;  %v679_v44 = vmul.f32 1e-08, %v1115_v34  ;;  %1124 = vrcp.f32 %v692_v37 }
 0x1d1   : > { %720 = vperm.xlu1 %1067, %v706_v33   ;;  %v648_v39 = vadd.f32 %v647_v46, %v646_v41  ;;  %v680_v26 = vmul.f32 1e-08, %v1117_v42  ;;  %1126 = vrcp.f32 %v691_v49 }
 0x1d2   : > { %v687_v50 = vadd.f32 %v679_v44, %v641_v40 }
 0x1d3   : > { %v1119_v45 = vpop.eup %1118  ;;  %v688_v52 = vadd.f32 %v680_v26, %v648_v39 }
 0x1d4   : > { %v705_v48 = vmul.f32 %v1119_v45, %v1420_v43  ;;  %v695_v51 = vmax.f32 %v687_v50, 1e-30 }
 0x1d5   : > { %v696_v57 = vmax.f32 %v688_v52, 1e-30 }
 0x1d6   : > { %715 = vperm.xlu0 %1066, %v705_v48   ;;  %1128 = vrcp.f32 %v695_v51 }
 0x1d7   : > { %1130 = vrcp.f32 %v696_v57 }
 0x1db   : > { %v1121_v53 = vpop.eup %1120 }
 0x1dc   : > { %v710_v56 = vmul.f32 %v1121_v53, %v1436_v0  ;;  %v1123_v58 = vpop.eup %1122 }
 0x1dd   : > { %v709_v59 = vmul.f32 %v1123_v58, %v1431_v14  ;;  %v1125_v43 = vpop.eup %1124  ;;  %v1228_v14 = vmov 0.0  }
 0x1de   : > { %740 = vperm.xlu1 %1067, %v710_v56   ;;  %v708_v60 = vmul.f32 %v1125_v43, %v1418_v35  ;;  %v1127_v62 = vpop.eup %1126  ;;  %817 = vst [vmem:[%s1458_s17] sm:$0xff] %v1228_v14 }
 0x1df   : > { %v707_v3 = vmul.f32 %v1127_v62, %v1428_v63 }
 0x1e2   : > { %735 = vperm.xlu1 %1067, %v709_v59  }
 0x1e3   : > { %v1129_v54 = vpop.eup %1128 }
 0x1e4   : > { %v711_v0 = vmul.f32 %v1129_v54, %v1442_v31  ;;  %v1131_v55 = vpop.eup %1130 }
 0x1e5   : > { %v712_v4 = vmul.f32 %v1131_v55, %v591_v17 }
 0x1e6   : > { %730 = vperm.xlu1 %1067, %v708_v60  }
 0x1ea   : > { %725 = vperm.xlu1 %1067, %v707_v3  }
 0x1ee   : > { %745 = vperm.xlu1 %1067, %v711_v0  }
 0x1f2   : > { %750 = vperm.xlu1 %1067, %v712_v4  }
 0x24c   : > { %v721_v12 = vpop.permute.xlu1 %720 }
 0x24d   : > { %v754_v13 = vmul.f32 %v721_v12, %v1351_v5 }
 0x24f   : > { %v768_v15 = vsel %vm309_vm0, %v754_v13, 0.0 }
 0x250   : > { %v769_v17 = vrot.slane %v768_v15, 4 }
 0x251   : > { %v716_v35 = vpop.permute.xlu0 %715 }
 0x252   : > { %v753_v63 = vmul.f32 %v716_v35, %v1346_v2  ;;  %v770_v5 = vadd.f32 %v769_v17, %v768_v15 }
 0x254   : > { %v761_v31 = vsel %vm309_vm0, %v753_v63, 0.0  ;;  %v771_v32 = vrot.slane %v770_v5, 2 }
 0x255   : > { %v762_v16 = vrot.slane %v761_v31, 4 }
 0x257   : > { %v763_v19 = vadd.f32 %v762_v16, %v761_v31 }
 0x259   : > { %v741_v61 = vpop.permute.xlu1 %740  ;;  %v764_v28 = vrot.slane %v763_v19, 2 }
 0x25a   : > { %v758_v47 = vmul.f32 %v741_v61, %v1360_v8 }
 0x25b   : > { %v765_v34 = vadd.f32 %v764_v28, %v763_v19 }
 0x25c   : > { %v796_v20 = vsel %vm309_vm0, %v758_v47, 0.0 }
 0x25d   : > { %v736_v1 = vpop.permute.xlu1 %735  ;;  %v797_v27 = vrot.slane %v796_v20, 4  ;;  %v766_v46 = vrot.slane %v765_v34, 1 }
 0x25e   : > { %v757_v18 = vmul.f32 %v736_v1, %v1357_v7 }
 0x25f   : > { %v798_v23 = vadd.f32 %v797_v27, %v796_v20  ;;  %v767_v58 = vadd.f32 %v766_v46, %v765_v34 }
 0x260   : > { %v789_v21 = vsel %vm309_vm0, %v757_v18, 0.0 }
 0x261   : > { %v790_v2 = vrot.slane %v789_v21, 4  ;;  %v731_v24 = vpop.permute.xlu1 %730  ;;  %v799_v44 = vrot.slane %v798_v23, 2 }
 0x262   : > { %v756_v25 = vmul.f32 %v731_v24, %v1370_v10  ;;  %v772_v10 = vadd.f32 %v771_v32, %v770_v5 }
 0x263   : > { %v791_v29 = vadd.f32 %v790_v2, %v789_v21  ;;  %v800_v53 = vadd.f32 %v799_v44, %v798_v23 }
 0x264   : > { %v782_v22 = vsel %vm309_vm0, %v756_v25, 0.0  ;;  %v773_v51 = vrot.slane %v772_v10, 1 }
 0x265   : > { %v783_v8 = vrot.slane %v782_v22, 4  ;;  %v726_v30 = vpop.permute.xlu1 %725  ;;  %v792_v37 = vrot.slane %v791_v29, 2  ;;  %v801_v0 = vrot.slane %v800_v53, 1 }
 0x266   : > { %v755_v7 = vmul.f32 %v726_v30, %v1354_v6  ;;  %v774_v54 = vadd.f32 %v773_v51, %v772_v10 }
 0x267   : > { %v784_v33 = vadd.f32 %v783_v8, %v782_v22  ;;  %v793_v50 = vadd.f32 %v792_v37, %v791_v29  ;;  %v802_v15 = vadd.f32 %v801_v0, %v800_v53 }
 0x268   : > { %v775_v36 = vsel %vm309_vm0, %v755_v7, 0.0 }
 0x269   : > { %v785_v38 = vrot.slane %v784_v33, 2  ;;  %v776_v40 = vrot.slane %v775_v36, 4  ;;  %v746_v41 = vpop.permute.xlu1 %745  ;;  %v794_v43 = vrot.slane %v793_v50, 1 }
 0x26a   : > { %v759_v42 = vmul.f32 %v746_v41, %v1365_v9 }
 0x26b   : > { %v777_v45 = vadd.f32 %v776_v40, %v775_v36  ;;  %v786_v48 = vadd.f32 %v785_v38, %v784_v33  ;;  %v795_v12 = vadd.f32 %v794_v43, %v793_v50 }
 0x26c   : > { %v803_v49 = vsel %vm309_vm0, %v759_v42, 0.0 }
 0x26d   : > { %v778_v6 = vrot.slane %v777_v45, 2  ;;  %v804_v39 = vrot.slane %v803_v49, 4  ;;  %v751_v26 = vpop.permute.xlu1 %750  ;;  %v787_v59 = vrot.slane %v786_v48, 1 }
 0x26e   : > { %v760_v52 = vmul.f32 %v751_v26, %v1379_v11  ;;  %v827_v11 = vsel %vm826_vm2, %v774_v54, %v767_v58 }
 0x26f   : > { %v779_v56 = vadd.f32 %v778_v6, %v777_v45  ;;  %v805_v57 = vadd.f32 %v804_v39, %v803_v49  ;;  %v788_v35 = vadd.f32 %v787_v59, %v786_v48 }
 0x270   : > { %v810_v9 = vsel %vm309_vm0, %v760_v52, 0.0 }
 0x271   : > { %v780_v60 = vrot.slane %v779_v56, 1  ;;  %v806_v62 = vrot.slane %v805_v57, 2  ;;  %v811_v3 = vrot.slane %v810_v9, 4 }
 0x273   : > { %v781_v55 = vadd.f32 %v780_v60, %v779_v56  ;;  %v807_v4 = vadd.f32 %v806_v62, %v805_v57  ;;  %v812_v14 = vadd.f32 %v811_v3, %v810_v9 }
 0x275   : > { %v829_v63 = vsel %vm828_vm3, %v781_v55, %v827_v11  ;;  %v808_v13 = vrot.slane %v807_v4, 1  ;;  %v813_v31 = vrot.slane %v812_v14, 2 }
 0x276   : > { %v831_v61 = vsel %vm830_vm4, %v788_v35, %v829_v63 }
 0x277   : > { %v833_v16 = vsel %vm832_vm5, %v795_v12, %v831_v61  ;;  %v814_v47 = vadd.f32 %v813_v31, %v812_v14  ;;  %v809_v1 = vadd.f32 %v808_v13, %v807_v4 }
 0x278   : > { %v835_v17 = vsel %vm834_vm6, %v802_v15, %v833_v16 }
 0x279   : > { %v815_v18 = vrot.slane %v814_v47, 1  ;;  %v837_v20 = vsel %vm836_vm7, %v809_v1, %v835_v17 }
 0x27b   : > { %v816_v19 = vadd.f32 %v815_v18, %v814_v47 }
 0x27d   : > { %v839_v21 = vsel %vm838_vm8, %v816_v19, %v837_v20 }
 0x27e   : > { %841 = vst.msk [vmem:[%s1458_s17] sm:$0xff] %vm309_vm0, %v839_v21 }
 0x27f   : > { %1171 = shalt.err (!%p1168_p0)
}
 0x280   : > { %s1172_s11 = scalar_lea.hbm %s1482_s22, 128  ;;  %s1176_s14 = scalar_lea.hbm %s1527_s6, 256 }
 0x281   : > { %p1173_p1 = scmp.ne.s32.totalorder %s1482_s22, %s1172_s11  ;;  %p1177_p4 = scmp.lt.s32.totalorder %s1482_s22, %s1527_s6 }
 0x282   : > { %p1178_p7 = scmp.lt.s32.totalorder %s1176_s14, %s1172_s11 }
 0x283   : > { %p1174_p2 = pnand %p1173_p1, %p1306_p5 }
 0x284   : > { %p1179_p8 = por %p1178_p7, %p1177_p4 }
 0x285   : > { %p1175_p3 = pneg %p1174_p2 }
 0x287   : > { %p1180_p6 = pnand %p1179_p8, %p1175_p3 }
 0x289   : > { %1183 = shalt.err (!%p1180_p6)
}
 0x28a   : > { %1016 = dma.vmem_to_hbm [thread:$0]  (%p1306_p5), %s857_s19, 128, %s1482_s22, %s843_s27  }
 0x28b PF: > { %p1028_p9 = scmp.ge.s32.totalorder %s1222_s26, 2  ;;  %s868_s17 = sand.u32 1, %s1210_s23  }
 0x28c   : > { %p1531_p10 = scmp.ne.s32.totalorder %s1529_s9, 0  ;;  %s869_s18 = scalar_lea.sflag [#allocation5], %s868_s17 }
 0x28e   : > { %p1023_p11 = pnand %p1028_p9, %p1531_p10 }
 0x290   : > { %p1024_p12 = pneg %p1023_p11 }
 0x292   : > { %1205 = dma.done.wait (%p1024_p12), %s869_s18, 128  }
 0x293   : > { %1207 = vsyncadd (%p1024_p12), %s869_s18, 4294967168  ;;  %p18_p13 = scmp.ge.s32.totalorder %s1293_s28, 4   ;;  %s1532_s23 = smov %s1214_s24 }
 0x294   : > { %s1533_s24 = smov %s1218_s25  ;;  %s1534_s25 = smov %s1304_s7 }
 0x295   : > { %s1535_s26 = smov %s1293_s28  ;;  %20 = sbr.rel (!%p18_p13) target bundleno = 6 (0x6), region = 87 }
 0x29a   :  { %874 = vsyncpa [#allocation4], 1 }
 0x29b   :  { %876 = vsyncpa [#allocation4 + $0x1], 1 }
 0x29c   :  { %877 = vsyncpa [#allocation5], 1 }
 0x29d   :  { %879 = vsyncpa [#allocation5 + $0x1], 1 }

</bundles_post_ra>
